<compile_context>
chip_gen: v6e
topology: v6e:2x2x1
jax: 0.10.0
libtpu: 0.0.40
codegen_flags: <defaults>
</compile_context>

<pallas_src>
import numpy as np
import jax
import jax.numpy as jnp
from jax.experimental import pallas as pl
from jax.experimental.pallas import tpu as pltpu


def _round_up(x: int, m: int) -> int:
    return ((x + m - 1) // m) * m


def _vmem_capacity_bytes() -> int:
    """Per-TensorCore VMEM capacity; conservative v7x default if unknown."""
    try:
        info = pltpu.get_tpu_info()
        for attr in ("vmem_capacity_bytes", "vmem_size_bytes", "vmem_bytes"):
            v = getattr(info, attr, None)
            if v:
                return int(v)
    except Exception:
        pass
    return 64 << 20  # v7x per-TC VMEM (v5e/v6e have 128 MiB; this is safe)


# ---------------------------------------------------------------------------
# Path 1: table resident in VMEM; vectorized gather as a one-hot MXU matmul.
# ---------------------------------------------------------------------------
def _onehot_gather_kernel(idx_ref, table_ref, out_ref):
    """idx_ref: (tb, 1) int32 block. table_ref: (V, D) full table (constant
    block index => DMA'd once, stays resident). out_ref: (tb, D) slab."""
    tb = out_ref.shape[0]
    V = table_ref.shape[0]
    idx = idx_ref[...]                                       # (tb, 1) int32
    iota = jax.lax.broadcasted_iota(jnp.int32, (tb, V), 1)   # (tb, V)
    onehot = (iota == idx).astype(table_ref.dtype)           # exact 0/1 weights
    out_ref[...] = jnp.dot(
        onehot,
        table_ref[...],
        preferred_element_type=jnp.float32,
        precision=jax.lax.Precision.HIGHEST,
    ).astype(out_ref.dtype)


# ---------------------------------------------------------------------------
# Path 2 (big-table fallback): table stays in HBM; each grid step gathers
# _FB_ROWS rows with that many concurrently outstanding row DMAs.
# ---------------------------------------------------------------------------
_FB_ROWS = 16


def _hbm_dma_gather_kernel(idx_smem_ref, table_hbm_ref, out_ref, row_buf, sems):
    base = pl.program_id(0) * _FB_ROWS
    # Issue every row fetch first so all _FB_ROWS tiny DMAs are in flight.
    for j in range(_FB_ROWS):
        row = idx_smem_ref[base + j]
        pltpu.make_async_copy(
            table_hbm_ref.at[pl.ds(row, 1), :],
            row_buf.at[pl.ds(j, 1), :],
            sems.at[j],
        ).start()
    for j in range(_FB_ROWS):
        pltpu.make_async_copy(
            table_hbm_ref.at[pl.ds(0, 1), :],   # src here only sizes the wait
            row_buf.at[pl.ds(j, 1), :],
            sems.at[j],
        ).wait()
    out_ref[...] = row_buf[...]
    # TODO(synk): double-buffer row_buf/sems across grid steps to overlap the
    # next block's row fetches with this block's writeback.


# ---------------------------------------------------------------------------
# Wrapper
# ---------------------------------------------------------------------------
def embedding_lookup(
    table: jax.Array,
    idx: jax.Array,
    *,
    block_rows: int = 1024,
    vmem_budget_bytes: int | None = None,   # None => derive from get_tpu_info
    max_onehot_vocab: int = 16384,
    onehot_bytes_budget: int = 512 * 1024,  # cap on (tb, V) f32 intermediate
) -> jax.Array:
    """Pallas equivalent of nn.Embedding(table)(idx).

    table: [V, D] float32 (V = vocab_size + 2: pretrained rows, unk, blank)
    idx:   [...]  integer (values expected in [0, V); clamped for safety)
    returns [..., D] with table.dtype
    """
    V, D = table.shape
    out_shape = idx.shape + (D,)
    dsize = jnp.dtype(table.dtype).itemsize

    # Clamp so a bad index can never silently address an arbitrary row
    # (bounds checks cover DMAs only).  PyTorch would raise instead.
    idx_flat = jnp.clip(idx.reshape(-1).astype(jnp.int32), 0, V - 1)
    N = int(idx_flat.shape[0])

    budget = vmem_budget_bytes if vmem_budget_bytes is not None else _vmem_capacity_bytes()
    table_bytes = V * D * dsize

    # ----- resident-path tile sizing -----
    tb = min(block_rows, _round_up(N, 8))
    tb_cap = max(8, (onehot_bytes_budget // (4 * V)) // 8 * 8)
    tb = max(8, (min(tb, tb_cap) // 8) * 8)
    out_blk_bytes = tb * D * dsize
    usage = (
        2 * table_bytes        # table input (Pallas double-buffers by default)
        + 2 * tb * 4           # (tb, 1) index blocks
        + 2 * out_blk_bytes    # (tb, D) output blocks
        + tb * V * 4           # one-hot intermediate (may spill to VMEM)
        + (4 << 20)            # headroom for pipeline state / spills
    )
    resident_ok = (V <= max_onehot_vocab) and (usage <= int(0.9 * budget))

    if resident_ok:
        # -------- VMEM-resident table, one-hot MXU gather --------
        n_pad = _round_up(N, tb)
        idx_2d = idx_flat.reshape(-1, 1)
        if n_pad != N:
            idx_2d = jnp.pad(idx_2d, ((0, n_pad - N), (0, 0)))
        n_blocks = n_pad // tb
        vmem_limit = int(min(budget, max(2 * usage, 32 << 20)))

        out_flat = pl.pallas_call(
            _onehot_gather_kernel,
            out_shape=jax.ShapeDtypeStruct((n_pad, D), table.dtype),
            grid=(n_blocks,),
            in_specs=[
                # Per-step index slice, blocked into VMEM (no SMEM ceiling).
                pl.BlockSpec((tb, 1), lambda i: (i, 0)),
                # Whole table, same block every step => DMA'd once, resident.
                pl.BlockSpec((V, D), lambda i: (0, 0)),
            ],
            out_specs=pl.BlockSpec((tb, D), lambda i: (i, 0)),
            compiler_params=pltpu.CompilerParams(
                dimension_semantics=("parallel",),   # shard blocks across TCs on v7x
                vmem_limit_bytes=vmem_limit,
            ),
        )(idx_2d, table)
    else:
        # -------- HBM table, batched manual-DMA row gather --------
        n_pad = _round_up(N, _FB_ROWS)
        idx_p = jnp.pad(idx_flat, (0, n_pad - N)) if n_pad != N else idx_flat
        n_blocks = n_pad // _FB_ROWS

        out_flat = pl.pallas_call(
            _hbm_dma_gather_kernel,
            out_shape=jax.ShapeDtypeStruct((n_pad, D), table.dtype),
            grid_spec=pltpu.PrefetchScalarGridSpec(
                num_scalar_prefetch=1,               # flat indices -> SMEM
                grid=(n_blocks,),
                in_specs=[pl.BlockSpec(memory_space=pl.ANY)],  # table stays in HBM
                out_specs=pl.BlockSpec((_FB_ROWS, D), lambda i, idx_sm: (i, 0)),
                scratch_shapes=[
                    pltpu.VMEM((_FB_ROWS, D), table.dtype),
                    pltpu.SemaphoreType.DMA((_FB_ROWS,)),
                ],
            ),
            compiler_params=pltpu.CompilerParams(
                dimension_semantics=("arbitrary",),
            ),
        )(idx_p, table)
        # TODO(synk): for very large token counts, deliver indices per block
        # (SMEM-blocked input) instead of whole-array scalar prefetch.

    return out_flat[:N].reshape(out_shape)


def build_embedding_table(key, vocab_size: int, embedding_dim: int) -> jax.Array:
    """Mirror Embedding_word.__init__: [pretrained weights; unk (xavier); blank (zeros)]."""
    k_w, k_unk = jax.random.split(key)
    weights = jax.random.normal(k_w, (vocab_size, embedding_dim), dtype=jnp.float32)
    # xavier_uniform_ on a (1, embedding_dim) tensor: bound = sqrt(6 / (D + 1))
    bound = float(np.sqrt(6.0 / (embedding_dim + 1.0)))
    unk = jax.random.uniform(
        k_unk, (1, embedding_dim), minval=-bound, maxval=bound, dtype=jnp.float32
    )
    blank = jnp.zeros((1, embedding_dim), dtype=jnp.float32)
    return jnp.concatenate([weights, unk, blank], axis=0)  # [vocab_size + 2, D]


if __name__ == "__main__":
    vocab_size = 16
    embedding_dim = 32
    batch, seq = 2, 8

    key = jax.random.PRNGKey(0)
    k_table, k_idx = jax.random.split(key)

    table = build_embedding_table(k_table, vocab_size, embedding_dim)  # [18, 32]

    # indices may hit the unk (vocab_size) and blank (vocab_size + 1) rows too
    idx_input = jax.random.randint(
        k_idx, (batch, seq), minval=0, maxval=vocab_size + 2, dtype=jnp.int32
    )

    ref = jnp.take(table, idx_input, axis=0)

    # Default path: VMEM-resident table, vectorized one-hot MXU gather.
    out = jax.block_until_ready(embedding_lookup(table, idx_input))
    assert out.shape == (batch, seq, embedding_dim)
    assert out.dtype == jnp.float32
    np.testing.assert_allclose(np.asarray(out), np.asarray(ref), rtol=2e-5, atol=1e-6)

    # Forced big-table path (batched manual-DMA HBM row gather), exercised so
    # both code paths are validated on-device.  Pure copies => exact.
    out_fb = jax.block_until_ready(
        embedding_lookup(table, idx_input, vmem_budget_bytes=0)
    )
    np.testing.assert_allclose(np.asarray(out_fb), np.asarray(ref), rtol=0, atol=0)

    print("KERNEL_OK")
</pallas_src>

<mosaic_0001>
module attributes {stable_mosaic.version = 11 : i64} {
  func.func @_onehot_gather_kernel(%arg0: i32, %arg1: memref<16x1xi32, #tpu.memory_space<vmem>>, %arg2: memref<18x32xf32, #tpu.memory_space<vmem>>, %arg3: memref<16x32xf32, #tpu.memory_space<vmem>>) attributes {dimension_semantics = [#tpu.dimension_semantics<parallel>], iteration_bounds = array<i64: 1>, scalar_prefetch = 0 : i64, scratch_operands = 0 : i64, tpu.core_type = #tpu.core_type<tc>, window_params = [{transform_indices = @transform_0, window_bounds = array<i64: 16, 1>}, {pipeline_mode = #tpu.pipeline_mode<synchronous>, transform_indices = @transform_1, window_bounds = array<i64: 18, 32>}, {transform_indices = @transform_2, window_bounds = array<i64: 16, 32>}]} {
    %c0 = arith.constant 0 : index
    %c0_0 = arith.constant 0 : index
    %0 = vector.load %arg1[%c0, %c0_0] : memref<16x1xi32, #tpu.memory_space<vmem>>, vector<16x1xi32>
    %1 = tpu.iota {dimensions = array<i32: 1>} : vector<16x18xi32>
    %2 = vector.broadcast %0 : vector<16x1xi32> to vector<16x18xi32>
    %3 = arith.cmpi eq, %1, %2 : vector<16x18xi32>
    %4 = arith.extui %3 : vector<16x18xi1> to vector<16x18xi32>
    %5 = arith.sitofp %4 : vector<16x18xi32> to vector<16x18xf32>
    %c0_1 = arith.constant 0 : index
    %c0_2 = arith.constant 0 : index
    %6 = vector.load %arg2[%c0_1, %c0_2] : memref<18x32xf32, #tpu.memory_space<vmem>>, vector<18x32xf32>
    %cst = arith.constant dense<0.000000e+00> : vector<16x32xf32>
    %7 = tpu.matmul %5, %6, %cst {dimension_numbers = #tpu.dot_dimension_numbers<[1], [0], [0], [1], [0, 0, 1, 1], [], []>, precision = #tpu.contract_precision<fp32>} : vector<16x18xf32>, vector<18x32xf32>, vector<16x32xf32> -> vector<16x32xf32>
    %c0_3 = arith.constant 0 : index
    %c0_4 = arith.constant 0 : index
    %8 = vector.load %arg3[%c0_3, %c0_4] : memref<16x32xf32, #tpu.memory_space<vmem>>, vector<16x32xf32>
    tpu.vector_store %arg3[%c0_3, %c0_4], %7 {strides = array<i32>} : memref<16x32xf32, #tpu.memory_space<vmem>>, vector<16x32xf32>,
    return
  }
  func.func @transform_0(%arg0: i32) -> (i32, i32) {
    %c0_i32 = arith.constant 0 : i32
    %c0_i32_0 = arith.constant 0 : i32
    return %arg0, %c0_i32 : i32, i32
  }
  func.func @transform_1(%arg0: i32) -> (i32, i32) {
    %c0_i32 = arith.constant 0 : i32
    %c0_i32_0 = arith.constant 0 : i32
    %c0_i32_1 = arith.constant 0 : i32
    return %c0_i32, %c0_i32_0 : i32, i32
  }
  func.func @transform_2(%arg0: i32) -> (i32, i32) {
    %c0_i32 = arith.constant 0 : i32
    %c0_i32_0 = arith.constant 0 : i32
    return %arg0, %c0_i32 : i32, i32
  }
}

</mosaic_0001>

<bundles_post_ra>
// kernel: tpu_custom_call.1
= control target key start
LH: loop header
LB: loop body
LE: loop exit
PB: predicated region body
PF: predicated region fallthrough
CT: control target
= control target key end

     0   :  { %7 = vsyncpa [#allocation3], 0  ;;  %s817_s0 = inlined_call_operand.vmem [shape: s32[16,1], index: 0, kind: input, shape index: {}]   ;;  %s818_s1 = inlined_call_operand.hbm [shape: f32[18,32], index: 1, kind: input, shape index: {}]   ;;  %s819_s2 = inlined_call_operand.hbm [shape: f32[16,32], index: 2, kind: output, shape index: {}]  }
   0x1   :  { %8 = vsyncpa [#allocation4], 0  ;;  %s734_s9 = smov [#allocation2]  }
   0x2   :  { %s16_s10 = sshll.u32 %s734_s9, 4  ;;  %s17_s10 = int_to_ptr.vmem [resolvable:$true] %s16_s10 }
   0x3   :  { %s698_s11 = scalar_lea.vmem %s17_s10, 384  ;;  %p703_p1 = scmp.lt.s32.totalorder %s17_s10, %s17_s10 }
   0x4   :  { %p699_p0 = scmp.ne.s32.totalorder %s17_s10, %s698_s11  ;;  %p704_p2 = scmp.lt.s32.totalorder %s698_s11, %s698_s11 }
   0x6   :  { %p705_p3 = por %p704_p2, %p703_p1 }
   0x8   :  { %p706_p4 = pnand %p705_p3, %p699_p0 }
   0xa   :  { %709 = shalt.err (!%p706_p4)
}
   0xb   :  { %s735_s12 = smov 128   ;;  %s736_s13 = smov 8  }
   0xc   :  { %22 = dma.hbm_to_vmem [thread:$0]  %s818_s1, 384, %s17_s10, [#allocation3], %s735_s12, %s735_s12, %s736_s13  }
   0xd   :  { %730 = dma.done.wait [#allocation3], 384  }
   0xe   :  { %731 = vsyncadd [#allocation3], 4294966912  ;;  %v737_v0 = vmov 0   ;;  %vm52_vm0 = vcmask 1041408   ;;  %v26_v1 = vld [vmem:[%s817_s0] sm:$0xff]  ;;  %v43_v4 = vld [vmem:[#allocation2 + $0x8] sm:$0xff]  ;;  %v28_v22 = vlaneseq }
   0xf   :  { %689 = vset.pattern.permute.xlu0 %v737_v0  ;;  %v44_v2 = vld [vmem:[#allocation2 + $0x10] sm:$0x3]  ;;  %v42_v5 = vld [vmem:[#allocation2] sm:$0xff]  ;;  %v27_v6 = vld [vmem:[%s817_s0 + $0x8] sm:$0xff]  ;;  %v86_v8 = vand.u32 4294901760, %v43_v4  ;;  %vm45_vm1 = vcmask 146432  }
  0x10   :  { %31 = vperm.xlu0 %689, %v26_v1   ;;  %v54_v3 = vsel %vm52_vm0, %v44_v2, 0  ;;  %v767_v9 = vand.u32 4294901760, %v42_v5  ;;  %v29_v23 = vand.u32 127, %v28_v22  ;;  %v738_v25 = vmov 0.0   ;;  %s739_s0 = smov [#allocation5]  }
  0x11   :  { %v83_v7 = vand.u32 4294901760, %v54_v3  ;;  %v769_v11 = vsub.f32 %v43_v4, %v86_v8  ;;  %vm571_vm4 = vcmask 261120   ;;  %s579_s1 = sshll.u32 %s739_s0, 4  ;;  %s580_s1 = int_to_ptr.vmem [resolvable:$true] %s579_s1 }
  0x12   :  { %v772_v12 = vsub.f32 %v42_v5, %v767_v9  ;;  %s710_s20 = scalar_lea.vmem %s580_s1, 256  ;;  %p715_p6 = scmp.lt.s32.totalorder %s580_s1, %s580_s1 }
  0x13   :  { %v172_v10 = vsub.f32 %v54_v3, %v83_v7  ;;  %629 = vmatprep.subr.mxu0 %v83_v7  ;;  %v777_v14 = vand.u32 4294901760, %v769_v11  ;;  %p711_p5 = scmp.ne.s32.totalorder %s580_s1, %s710_s20  ;;  %p716_p7 = scmp.lt.s32.totalorder %s710_s20, %s710_s20 }
  0x14   :  { %34 = vperm.xlu0 %689, %v27_v6   ;;  %630 = vmatpush3.msra.mxu0 %v83_v7  ;;  %v780_v15 = vand.u32 4294901760, %v772_v12 }
  0x15   :  { %v774_v13 = vand.u32 4294901760, %v172_v10  ;;  %631 = vmatprep.subr.mxu0 %v86_v8  ;;  %v181_v17 = vsub.f32 %v769_v11, %v777_v14  ;;  %p717_p8 = por %p716_p7, %p715_p6 }
  0x16   :  { %632 = vmatpush3.msra.mxu0 %v86_v8  ;;  %v188_v18 = vsub.f32 %v772_v12, %v780_v15 }
  0x17   :  { %v174_v16 = vsub.f32 %v172_v10, %v774_v13  ;;  %633 = vmatprep.subr.mxu0 %v767_v9  ;;  %v182_v20 = vand.u32 4294901760, %v181_v17  ;;  %p718_p9 = pnand %p717_p8, %p711_p5 }
  0x18   :  { %634 = vmatpush3.msra.mxu0 %v767_v9  ;;  %v189_v21 = vand.u32 4294901760, %v188_v18 }
  0x19   :  { %v175_v19 = vand.u32 4294901760, %v174_v16  ;;  %647 = vmatprep.subr.mxu0 %v172_v10 }
  0x1b   :  { %638 = vmatprep.subr.mxu1 %v175_v19 }
  0x1c   :  { %639 = vmatpush3.msra.mxu1 %v175_v19 }
  0x1d   :  { %640 = vmatprep.subr.mxu1 %v182_v20 }
  0x1e   :  { %641 = vmatpush3.msra.mxu1 %v182_v20 }
  0x1f   :  { %642 = vmatprep.subr.mxu1 %v189_v21 }
  0x20   :  { %643 = vmatpush3.msra.mxu1 %v189_v21 }
  0x21   :  { %656 = vmatprep.subr.mxu1 %v83_v7 }
  0x8b   :  { %v32_v24 = vpop.permute.xlu0 %31 }
  0x8c   :  { %vm36_vm2 = vcmp.eq.s32.totalorder %v29_v23, %v32_v24 }
  0x8d   :  { %v591_v26 = vsel %vm36_vm2, 1.0, %v738_v25 }
  0x8e   :  { %v47_v27 = vsel %vm45_vm1, %v591_v26, 0  ;;  %644 = vmatprep.mubr.msk.f32.mxu1 %vm45_vm1, %v591_v26 }
  0x8f   :  { %v125_v28 = vsub.f32 %v47_v27, %v47_v27  ;;  %v35_v29 = vpop.permute.xlu0 %34 }
  0x90   :  { %vm37_vm3 = vcmp.eq.s32.totalorder %v29_v23, %v35_v29 }
  0x91   :  { %v592_v30 = vsel %vm37_vm3, 1.0, %v738_v25  ;;  %v126_v31 = vand.u32 4294901760, %v125_v28 }
  0x92   :  { %v50_v32 = vsel %vm45_vm1, %v592_v30, 0  ;;  %645 = vmatmul.mubr.msk.f32.vlgmr.msra.gmra.mxu1 %vm45_vm1, %v592_v30 }
  0x93   :  { %v135_v33 = vsub.f32 %v50_v32, %v50_v32  ;;  %657 = vmatpush3.msra.mxu1 %v83_v7  ;;  %662 = vmatprep.mubr.f32.mxu1 %v126_v31  ;;  %v127_v34 = vsub.f32 %v125_v28, %v126_v31 }
  0x94   :  { %658 = vmatprep.subr.mxu1 %v86_v8 }
  0x95   :  { %659 = vmatpush3.msra.mxu1 %v86_v8  ;;  %v128_v35 = vand.u32 4294901760, %v127_v34  ;;  %v136_v36 = vand.u32 4294901760, %v135_v33 }
  0x96   :  { %660 = vmatprep.subr.mxu1 %v767_v9 }
  0x97   :  { %661 = vmatpush3.msra.mxu1 %v767_v9  ;;  %635 = vmatprep.mubr.f32.mxu0 %v128_v35  ;;  %v137_v37 = vsub.f32 %v135_v33, %v136_v36 }
  0x98   :  { %663 = vmatmul.mubr.f32.vlgmr.msra.gmra.mxu1 %v136_v36  ;;  %674 = vmatprep.subr.mxu1 %v83_v7 }
  0x99   :  { %675 = vmatpush3.msra.mxu1 %v83_v7  ;;  %680 = vmatprep.mubr.msk.f32.mxu1 %vm45_vm1, %v591_v26  ;;  %v138_v38 = vand.u32 4294901760, %v137_v37 }
  0x9a   :  { %676 = vmatprep.subr.mxu1 %v86_v8 }
  0x9b   :  { %677 = vmatpush3.msra.mxu1 %v86_v8  ;;  %636 = vmatmul.mubr.f32.vlgmr.msra.gmra.mxu0 %v138_v38 }
  0x9c   :  { %648 = vmatpush3.msra.mxu0 %v172_v10  ;;  %678 = vmatprep.subr.mxu1 %v767_v9 }
  0x9d   :  { %649 = vmatprep.subr.mxu0 %v769_v11  ;;  %653 = vmatprep.mubr.f32.mxu0 %v125_v28 }
  0x9e   :  { %679 = vmatpush3.msra.mxu1 %v767_v9  ;;  %650 = vmatpush3.msra.mxu0 %v769_v11 }
  0x9f   :  { %681 = vmatmul.mubr.msk.f32.vlgmr.msra.gmra.mxu1 %vm45_vm1, %v592_v30  ;;  %651 = vmatprep.subr.mxu0 %v772_v12 }
  0xa0   :  { %652 = vmatpush3.msra.mxu0 %v772_v12 }
  0xa1   :  { %654 = vmatmul.mubr.f32.vlgmr.msra.gmra.mxu0 %v135_v33  ;;  %665 = vmatprep.subr.mxu0 %v774_v13 }
  0xa2   :  { %666 = vmatpush3.msra.mxu0 %v774_v13  ;;  %671 = vmatprep.mubr.msk.f32.mxu0 %vm45_vm1, %v591_v26 }
  0xa3   :  { %667 = vmatprep.subr.mxu0 %v777_v14 }
  0xa4   :  { %668 = vmatpush3.msra.mxu0 %v777_v14 }
  0xa5   :  { %669 = vmatprep.subr.mxu0 %v780_v15 }
  0xa6   :  { %670 = vmatpush3.msra.mxu0 %v780_v15 }
  0xa7   :  { %672 = vmatmul.mubr.msk.f32.vlgmr.msra.gmra.mxu0 %vm45_vm1, %v592_v30 }
 0x152   :  { %v646_v39 = vpop.f32.mrf.mxu1 }
 0x154   :  { %v226_v41 = vpop.f32.mrf.mxu1 }
 0x158   :  { %v664_v44 = vpop.f32.mrf.mxu1 }
 0x15a   :  { %v393_v50 = vpop.f32.mrf.mxu1 }
 0x15b   :  { %v637_v40 = vpop.f32.mrf.mxu0 }
 0x15c   :  { %v233_v43 = vadd.f32 %v646_v39, %v637_v40 }
 0x15d   :  { %v130_v42 = vpop.f32.mrf.mxu0 }
 0x15e   :  { %v227_v46 = vadd.f32 %v226_v41, %v130_v42 }
 0x15f   :  { %v682_v52 = vpop.f32.mrf.mxu1 }
 0x161   :  { %v655_v45 = vpop.f32.mrf.mxu0  ;;  %v561_v59 = vpop.f32.mrf.mxu1 }
 0x162   :  { %v318_v47 = vadd.f32 %v655_v45, %v233_v43 }
 0x163   :  { %v310_v48 = vpop.f32.mrf.mxu0 }
 0x164   :  { %v311_v49 = vadd.f32 %v310_v48, %v227_v46  ;;  %v402_v51 = vadd.f32 %v664_v44, %v318_v47 }
 0x166   :  { %v394_v55 = vadd.f32 %v393_v50, %v311_v49 }
 0x167   :  { %v673_v53 = vpop.f32.mrf.mxu0 }
 0x168   :  { %v488_v54 = vadd.f32 %v673_v53, %v402_v51 }
 0x169   :  { %v481_v56 = vpop.f32.mrf.mxu0 }
 0x16a   :  { %v568_v57 = vadd.f32 %v682_v52, %v488_v54  ;;  %v482_v58 = vadd.f32 %v481_v56, %v394_v55 }
 0x16c   :  { %v562_v60 = vadd.f32 %v561_v59, %v482_v58  ;;  %573 = vst.msk [vmem:[#allocation5 + $0x8] sm:$0xff] %vm571_vm4, %v568_v57 }
 0x16e   :  { %572 = vst.msk [vmem:[#allocation5] sm:$0xff] %vm571_vm4, %v562_v60 }
 0x16f   :  { %721 = shalt.err (!%p718_p9)
}
 0x170   :  { %585 = dma.vmem_to_hbm [thread:$0]  %s580_s1, 256, %s819_s2, [#allocation4], %s735_s12, %s735_s12, %s736_s13  }
 0x171   :  { %732 = dma.done.wait [#allocation4], 256  }
 0x172   :  { %733 = vsyncadd [#allocation4], 4294967040 }
 0x173   :  { %589 = vsyncpa [#allocation3], 1 }
 0x174   :  { %590 = vsyncpa [#allocation4], 1 }

</bundles_post_ra>
